<compile_context>
chip_gen: v7x
topology: tpu7x:2x2x1
jax: 0.10.0
libtpu: 0.0.40
codegen_flags: <defaults>
</compile_context>

<pallas_src>
import jax
import jax.numpy as jnp
from jax import lax
from jax.experimental import pallas as pl
from jax.experimental.pallas import tpu as pltpu

EPS = 1e-5  # nn.BatchNorm2d default eps


def _band_start(Kin):
    # bf16 sublane tiling is (16, 128): start band B on a 16-row boundary
    return ((Kin + 15) // 16) * 16


# ----------------------------- Pallas kernel ------------------------------ #
def _make_kernel(N, H, W, Cin, Cout):
    """Build the encoder_block kernel for fixed (static) shapes."""
    L = W * Cout                 # folded lane width of Cout-channel activations
    Kin = W * Cin                # folded lane width of the input
    H2, W2 = H // 2, W // 2
    NH, NH2 = N * H, N * H2
    Kh = N * (H - 1)             # rows of the H-pair-max tensor
    rB = _band_start(Kin)
    inv_cnt = 1.0 / float(N * H * W)

    # rows of the f32 vector block (must match _pack_vecs)
    R_WDW, R_BDW, R_BSH = 0, 9, 10
    R_G1, R_BE1, R_BPW, R_G2, R_BE2 = 13, 14, 15, 16, 17

    def kernel(x_ref, mat_ref, vec_ref, xo_ref, po_ref):
        f32, bf16 = jnp.float32, jnp.bfloat16

        # ---- parameters: one bf16 matrix block + one f32 vector block --------
        m_red = mat_ref[0:Kin, :]                          # (Kin, 3L)   fused 1x1
        m_pw = mat_ref[rB:rB + L, 0:L]                     # (L, L)      pointwise
        sel_w = mat_ref[rB:rB + L, L:2 * L]                # (L, L)   [even | odd]
        sel_h = mat_ref[rB:rB + NH2, 2 * L:2 * L + Kh]     # (N*H2, N*(H-1))

        w_dw = vec_ref[R_WDW:R_WDW + 9, :]                 # (9, L) depthwise taps
        b_dw = vec_ref[R_BDW:R_BDW + 1, :]
        b_sh = vec_ref[R_BSH:R_BSH + 3, :]                 # 3 shifted reduce biases
        g1, be1 = vec_ref[R_G1:R_G1 + 1, :], vec_ref[R_BE1:R_BE1 + 1, :]
        b_pw = vec_ref[R_BPW:R_BPW + 1, :]
        g2, be2 = vec_ref[R_G2:R_G2 + 1, :], vec_ref[R_BE2:R_BE2 + 1, :]

        # ---- reduce_channels: ONE fused bf16 MXU matmul for all 3 w-shifts ---
        # slab d holds conv1x1(x)+b at source column w+(d-1), zeros outside.
        x2 = x_ref[...].reshape(NH, Kin).astype(bf16)
        y_all = jnp.dot(x2, m_red, preferred_element_type=f32)      # (NH, 3L)
        y = [(y_all[:, d * L:(d + 1) * L] + b_sh[d:d + 1, :]).reshape(N, H, L)
             for d in range(3)]                                      # 128-aligned

        # ---- depthwise 3x3: per-ky lane MACs, then only two H shifts ---------
        # out[h] = b_dw + s0[h-1] + s1[h] + s2[h+1],  s_ky = sum_kx tap*slab_kx
        s = []
        for ky in range(3):
            t = y[0] * w_dw[3 * ky + 0:3 * ky + 1, :]
            t = t + y[1] * w_dw[3 * ky + 1:3 * ky + 2, :]
            t = t + y[2] * w_dw[3 * ky + 2:3 * ky + 3, :]
            s.append(t)
        zrow = jnp.zeros((N, 1, L), f32)
        acc = s[1] + b_dw
        acc = acc + jnp.concatenate([zrow, s[0][:, :H - 1, :]], axis=1)  # h-1
        acc = acc + jnp.concatenate([s[2][:, 1:, :], zrow], axis=1)      # h+1
        acc = acc.reshape(NH, L)

        # ---- BatchNorm (+ReLU) with exact-f32 batch statistics ---------------
        # channel of lane l is l % Cout; the W lane-slots of a channel are
        # aggregated with log2(W) XLU lane roll-adds (no chan_agg matmuls).
        def bn_relu(t2, gamma, beta):
            ss = jnp.concatenate(
                [jnp.sum(t2, axis=0, keepdims=True),
                 jnp.sum(t2 * t2, axis=0, keepdims=True)], axis=0)   # (2, L)
            sh = Cout
            while sh < L:                       # requires W to be a power of 2
                ss = ss + pltpu.roll(ss, sh, axis=1)
                sh *= 2
            mean = ss[0:1, :] * inv_cnt
            var = ss[1:2, :] * inv_cnt - mean * mean
            scale = gamma * lax.rsqrt(var + EPS)      # BN affine folded:
            bias = beta - mean * scale                #   y = max(t*scale+bias, 0)
            return jnp.maximum(t2 * scale + bias, 0.0)

        z = bn_relu(acc, g1, be1)                                    # (NH, L)

        # ---- pointwise 1x1: single batched bf16 matmul (no VMEM round trip) --
        u = jnp.dot(z.astype(bf16), m_pw, preferred_element_type=f32) + b_pw
        xo = bn_relu(u, g2, be2)                                     # (NH, L)

        xo_ref[...] = xo.reshape(N, H, L)    # lane-dense (L=128): unmasked store

        # ---- MaxPool2d((2, 2), stride 2): batched selection matmuls ----------
        xo3 = xo.reshape(N, H, L)
        mh = jnp.maximum(xo3[:, :H - 1, :], xo3[:, 1:, :]).reshape(Kh, L)
        t = jnp.dot(sel_h, mh.astype(bf16), preferred_element_type=f32)  # (NH2, L)
        pw = jnp.dot(t.astype(bf16), sel_w, preferred_element_type=f32)  # (NH2, L)
        po = jnp.maximum(pw[:, :W2 * Cout], pw[:, W2 * Cout:])           # (NH2, 64)
        # lane-dense pooled output (H2, N*W2*Cout)=128 lanes; 8-row-aligned slices
        po_ref[...] = jnp.concatenate(
            [po[n * H2:(n + 1) * H2, :] for n in range(N)], axis=-1)

    return kernel


# ------------------------------ wrapper ----------------------------------- #
def _full_spec(shape):
    return pl.BlockSpec(shape, lambda *_: (0,) * len(shape))


def _pack_mats(params, N, H, W, Cin, Cout):
    """One bf16 block: [ fused 1x1 matrices ; pointwise | pool selections ]."""
    f32 = jnp.float32
    L, Kin = W * Cout, W * Cin
    H2, W2 = H // 2, W // 2
    w_red = params["w_red"].astype(f32)                 # (Cin, Cout)
    w_pw = params["w_pw"].astype(f32)                   # (Cout, Cout)

    # shifted identities E_dx[w', w] = 1 iff w' == w + dx (zero pad baked in)
    shifts = [jnp.eye(W, k=1, dtype=f32),               # dx = -1
              jnp.eye(W, dtype=f32),                    # dx =  0
              jnp.eye(W, k=-1, dtype=f32)]              # dx = +1
    m_red = jnp.concatenate([jnp.kron(e, w_red) for e in shifts], axis=1)  # (Kin,3L)

    p_mat = jnp.kron(jnp.eye(W, dtype=f32), w_pw)                          # (L, L)

    # pool column selections: output lane j = w2*Cout + c picks source w=2*w2(+1)
    l = jnp.arange(L)[:, None]
    j = jnp.arange(W2 * Cout)[None, :]
    base = (j // Cout) * (2 * Cout) + (j % Cout)
    sel_even = (l == base).astype(f32)
    sel_odd = (l == base + Cout).astype(f32)
    sel_w = jnp.concatenate([sel_even, sel_odd], axis=1)                   # (L, L)

    # pool row selection, block-diagonal over N: picks row 2*h2 of each n-block
    blk = (jnp.arange(H - 1)[None, :] == 2 * jnp.arange(H2)[:, None]).astype(f32)
    sel_h = jnp.kron(jnp.eye(N, dtype=f32), blk)            # (N*H2, N*(H-1))
    sel_h = jnp.pad(sel_h, ((0, L - N * H2), (0, L - N * (H - 1))))        # (L, L)

    rB = _band_start(Kin)
    top = jnp.pad(m_red, ((0, rB - Kin), (0, 0)))                          # (rB, 3L)
    bottom = jnp.concatenate([p_mat, sel_w, sel_h], axis=1)                # (L, 3L)
    return jnp.concatenate([top, bottom], axis=0).astype(jnp.bfloat16)


def _pack_vecs(params, W, Cout):
    """One f32 block of per-channel vectors, lane-tiled across the W slots."""
    f32 = jnp.float32
    L = W * Cout

    def lane_tile(v):                                    # (.., Cout) -> (1, L)
        return jnp.tile(jnp.reshape(v.astype(f32), (1, Cout)), (1, W))

    w_dw = jnp.tile(params["w_dw"].astype(f32), (1, W))                  # (9, L)
    b0 = lane_tile(params["b_red"])
    wcol = jnp.arange(L)[None, :] // Cout
    b_m1 = b0 * (wcol >= 1).astype(f32)          # source column w-1 valid
    b_p1 = b0 * (wcol <= W - 2).astype(f32)      # source column w+1 valid

    rows = [w_dw, lane_tile(params["b_dw"]),
            b_m1, b0, b_p1,
            lane_tile(params["g1"]), lane_tile(params["be1"]),
            lane_tile(params["b_pw"]),
            lane_tile(params["g2"]), lane_tile(params["be2"])]
    return jnp.concatenate(rows, axis=0)                                 # (18, L)


def encoder_block_forward(x_nhwc, params):
    N, H, W, Cin = x_nhwc.shape
    Cout = params["w_red"].shape[1]
    L = W * Cout
    H2, W2 = H // 2, W // 2
    assert H % 2 == 0 and W % 2 == 0, "MaxPool2d(2,2) needs even H, W"
    assert W & (W - 1) == 0, "lane roll-reduce for BN stats needs power-of-two W"
    assert N * H2 <= L and N * (H - 1) <= L, "pool selection must fit packed block"

    x_folded = x_nhwc.reshape(N, H, W * Cin).astype(jnp.float32)  # lane-folded input
    mat_blk = _pack_mats(params, N, H, W, Cin, Cout)              # bf16 matrices
    vec_blk = _pack_vecs(params, W, Cout)                         # f32 vectors

    out_shape = (jax.ShapeDtypeStruct((N, H, L), jnp.float32),
                 jax.ShapeDtypeStruct((H2, N * W2 * Cout), jnp.float32))

    x_f, p_f = pl.pallas_call(
        _make_kernel(N, H, W, Cin, Cout),
        grid=(1,),
        in_specs=[_full_spec(x_folded.shape),
                  _full_spec(mat_blk.shape),
                  _full_spec(vec_blk.shape)],
        out_specs=(_full_spec((N, H, L)),
                   _full_spec((H2, N * W2 * Cout))),
        out_shape=out_shape,
        compiler_params=pltpu.CompilerParams(
            dimension_semantics=("arbitrary",)),
    )(x_folded, mat_blk, vec_blk)

    # un-fold the lane-dense kernel outputs back to NHWC (wrapper-side, cheap)
    x_out = x_f.reshape(N, H, W, Cout)
    p_out = p_f.reshape(H2, N, W2, Cout).transpose(1, 0, 2, 3)
    return x_out, p_out


# --------------------------- pure-JAX reference ---------------------------- #
def _ref_bn_relu(x, g, b):
    mean = jnp.mean(x, axis=(0, 1, 2), keepdims=True)
    var = jnp.mean(jnp.square(x - mean), axis=(0, 1, 2), keepdims=True)
    y = (x - mean) * lax.rsqrt(var + EPS) * g.reshape(1, 1, 1, -1) + b.reshape(1, 1, 1, -1)
    return jnp.maximum(y, 0.0)


def reference_forward(x_nhwc, params):
    dn = ("NHWC", "HWIO", "NHWC")
    prec = lax.Precision.HIGHEST
    Cin, Cout = params["w_red"].shape
    N, H, W, _ = x_nhwc.shape

    y = lax.conv_general_dilated(x_nhwc, params["w_red"].reshape(1, 1, Cin, Cout),
                                 (1, 1), "VALID", dimension_numbers=dn, precision=prec)
    y = y + params["b_red"].reshape(1, 1, 1, Cout)

    z = lax.conv_general_dilated(y, params["w_dw"].reshape(3, 3, 1, Cout),
                                 (1, 1), [(1, 1), (1, 1)], dimension_numbers=dn,
                                 feature_group_count=Cout, precision=prec)
    z = z + params["b_dw"].reshape(1, 1, 1, Cout)
    z = _ref_bn_relu(z, params["g1"], params["be1"])

    u = lax.conv_general_dilated(z, params["w_pw"].reshape(1, 1, Cout, Cout),
                                 (1, 1), "VALID", dimension_numbers=dn, precision=prec)
    u = u + params["b_pw"].reshape(1, 1, 1, Cout)
    u = _ref_bn_relu(u, params["g2"], params["be2"])

    p = u.reshape(N, H // 2, 2, W // 2, 2, Cout).max(axis=(2, 4))
    return u, p


# --------------------------------- main ------------------------------------ #
if __name__ == "__main__":
    key = jax.random.PRNGKey(0)
    N, H, W = 2, 16, 16
    in_c, out_c = 4, 8
    keys = jax.random.split(key, 7)

    # deterministic synthetic parameters (PyTorch init shapes, NOT a checkpoint)
    params = {
        "w_red": jax.random.normal(keys[0], (in_c, out_c), jnp.float32) * 0.2,
        "b_red": jax.random.normal(keys[1], (1, out_c), jnp.float32) * 0.1,
        "w_dw":  jax.random.normal(keys[2], (9, out_c), jnp.float32) * 0.2,   # (ky*3+kx, c)
        "b_dw":  jax.random.normal(keys[3], (1, out_c), jnp.float32) * 0.1,
        "g1":    jnp.ones((1, out_c), jnp.float32),   # BN weight init = 1
        "be1":   jnp.zeros((1, out_c), jnp.float32),  # BN bias init = 0
        "w_pw":  jax.random.normal(keys[4], (out_c, out_c), jnp.float32) * 0.2,
        "b_pw":  jax.random.normal(keys[5], (1, out_c), jnp.float32) * 0.1,
        "g2":    jnp.ones((1, out_c), jnp.float32),
        "be2":   jnp.zeros((1, out_c), jnp.float32),
    }

    x_nchw = jax.random.normal(keys[6], (N, in_c, H, W), jnp.float32)  # PyTorch layout
    x_nhwc = jnp.transpose(x_nchw, (0, 2, 3, 1))

    x_out, p_out = encoder_block_forward(x_nhwc, params)
    jax.block_until_ready((x_out, p_out))

    x_ref, p_ref = reference_forward(x_nhwc, params)
    assert x_out.shape == (N, H, W, out_c)
    assert p_out.shape == (N, H // 2, W // 2, out_c)
    # Tolerance note: the in-kernel conv/selection matmuls now use explicit bf16
    # operands (single-pass MXU) while the reference runs at Precision.HIGHEST;
    # with two BatchNorm renormalisations amplifying the bf16 rounding, 3e-2
    # covers that while still catching any structural/indexing/statistics bug
    # (those produce O(0.1..1) errors).
    if not (jnp.allclose(x_out, x_ref, atol=3e-2, rtol=3e-2)
            and jnp.allclose(p_out, p_ref, atol=3e-2, rtol=3e-2)):
        raise AssertionError("Pallas kernel output does not match JAX reference")

    # TODO(synk): BatchNorm running-statistics updates (a training-time side
    # effect with no influence on the returned tensors) are not emulated.
    print("KERNEL_OK")
</pallas_src>

<mosaic_0001>
module attributes {stable_mosaic.version = 11 : i64} {
  func.func @kernel(%arg0: i32, %arg1: memref<2x16x64xf32, #tpu.memory_space<vmem>>, %arg2: memref<192x384xbf16, #tpu.memory_space<vmem>>, %arg3: memref<18x128xf32, #tpu.memory_space<vmem>>, %arg4: memref<2x16x128xf32, #tpu.memory_space<vmem>>, %arg5: memref<8x128xf32, #tpu.memory_space<vmem>>) attributes {dimension_semantics = [#tpu.dimension_semantics<arbitrary>], iteration_bounds = array<i64: 1>, scalar_prefetch = 0 : i64, scratch_operands = 0 : i64, tpu.core_type = #tpu.core_type<tc>, window_params = [{pipeline_mode = #tpu.pipeline_mode<synchronous>, transform_indices = @transform_0, window_bounds = array<i64: 2, 16, 64>}, {pipeline_mode = #tpu.pipeline_mode<synchronous>, transform_indices = @transform_1, window_bounds = array<i64: 192, 384>}, {pipeline_mode = #tpu.pipeline_mode<synchronous>, transform_indices = @transform_2, window_bounds = array<i64: 18, 128>}, {pipeline_mode = #tpu.pipeline_mode<synchronous>, transform_indices = @transform_3, window_bounds = array<i64: 2, 16, 128>}, {pipeline_mode = #tpu.pipeline_mode<synchronous>, transform_indices = @transform_4, window_bounds = array<i64: 8, 128>}]} {
    %c0 = arith.constant 0 : index
    %c0_0 = arith.constant 0 : index
    %0 = vector.load %arg2[%c0, %c0_0] : memref<192x384xbf16, #tpu.memory_space<vmem>>, vector<64x384xbf16>
    %c64 = arith.constant 64 : index
    %c0_1 = arith.constant 0 : index
    %1 = vector.load %arg2[%c64, %c0_1] : memref<192x384xbf16, #tpu.memory_space<vmem>>, vector<128x128xbf16>
    %c64_2 = arith.constant 64 : index
    %c128 = arith.constant 128 : index
    %2 = vector.load %arg2[%c64_2, %c128] : memref<192x384xbf16, #tpu.memory_space<vmem>>, vector<128x128xbf16>
    %c64_3 = arith.constant 64 : index
    %c256 = arith.constant 256 : index
    %3 = vector.load %arg2[%c64_3, %c256] : memref<192x384xbf16, #tpu.memory_space<vmem>>, vector<16x30xbf16>
    %c0_4 = arith.constant 0 : index
    %c0_5 = arith.constant 0 : index
    %4 = vector.load %arg3[%c0_4, %c0_5] : memref<18x128xf32, #tpu.memory_space<vmem>>, vector<9x128xf32>
    %c9 = arith.constant 9 : index
    %c0_6 = arith.constant 0 : index
    %5 = vector.load %arg3[%c9, %c0_6] : memref<18x128xf32, #tpu.memory_space<vmem>>, vector<1x128xf32>
    %c10 = arith.constant 10 : index
    %c0_7 = arith.constant 0 : index
    %6 = vector.load %arg3[%c10, %c0_7] : memref<18x128xf32, #tpu.memory_space<vmem>>, vector<3x128xf32>
    %c13 = arith.constant 13 : index
    %c0_8 = arith.constant 0 : index
    %7 = vector.load %arg3[%c13, %c0_8] : memref<18x128xf32, #tpu.memory_space<vmem>>, vector<1x128xf32>
    %c14 = arith.constant 14 : index
    %c0_9 = arith.constant 0 : index
    %8 = vector.load %arg3[%c14, %c0_9] : memref<18x128xf32, #tpu.memory_space<vmem>>, vector<1x128xf32>
    %c15 = arith.constant 15 : index
    %c0_10 = arith.constant 0 : index
    %9 = vector.load %arg3[%c15, %c0_10] : memref<18x128xf32, #tpu.memory_space<vmem>>, vector<1x128xf32>
    %c16 = arith.constant 16 : index
    %c0_11 = arith.constant 0 : index
    %10 = vector.load %arg3[%c16, %c0_11] : memref<18x128xf32, #tpu.memory_space<vmem>>, vector<1x128xf32>
    %c17 = arith.constant 17 : index
    %c0_12 = arith.constant 0 : index
    %11 = vector.load %arg3[%c17, %c0_12] : memref<18x128xf32, #tpu.memory_space<vmem>>, vector<1x128xf32>
    %c0_13 = arith.constant 0 : index
    %c0_14 = arith.constant 0 : index
    %c0_15 = arith.constant 0 : index
    %12 = vector.load %arg1[%c0_13, %c0_14, %c0_15] : memref<2x16x64xf32, #tpu.memory_space<vmem>>, vector<2x16x64xf32>
    %13 = vector.shape_cast %12 : vector<2x16x64xf32> to vector<32x64xf32>
    %14 = arith.truncf %13 : vector<32x64xf32> to vector<32x64xbf16>
    %cst = arith.constant dense<0.000000e+00> : vector<32x384xf32>
    %15 = tpu.matmul %14, %0, %cst {dimension_numbers = #tpu.dot_dimension_numbers<[1], [0], [0], [1], [0, 0, 1, 1], [], []>} : vector<32x64xbf16>, vector<64x384xbf16>, vector<32x384xf32> -> vector<32x384xf32>
    %16 = vector.extract_strided_slice %15 {offsets = [0, 0], sizes = [32, 128], strides = [1, 1]} : vector<32x384xf32> to vector<32x128xf32>
    %17 = vector.extract_strided_slice %6 {offsets = [0, 0], sizes = [1, 128], strides = [1, 1]} : vector<3x128xf32> to vector<1x128xf32>
    %18 = vector.broadcast %17 : vector<1x128xf32> to vector<32x128xf32>
    %19 = arith.addf %16, %18 : vector<32x128xf32>
    %20 = vector.shape_cast %19 : vector<32x128xf32> to vector<2x16x128xf32>
    %21 = vector.extract_strided_slice %15 {offsets = [0, 128], sizes = [32, 128], strides = [1, 1]} : vector<32x384xf32> to vector<32x128xf32>
    %22 = vector.extract_strided_slice %6 {offsets = [1, 0], sizes = [1, 128], strides = [1, 1]} : vector<3x128xf32> to vector<1x128xf32>
    %23 = vector.broadcast %22 : vector<1x128xf32> to vector<32x128xf32>
    %24 = arith.addf %21, %23 : vector<32x128xf32>
    %25 = vector.shape_cast %24 : vector<32x128xf32> to vector<2x16x128xf32>
    %26 = vector.extract_strided_slice %15 {offsets = [0, 256], sizes = [32, 128], strides = [1, 1]} : vector<32x384xf32> to vector<32x128xf32>
    %27 = vector.extract_strided_slice %6 {offsets = [2, 0], sizes = [1, 128], strides = [1, 1]} : vector<3x128xf32> to vector<1x128xf32>
    %28 = vector.broadcast %27 : vector<1x128xf32> to vector<32x128xf32>
    %29 = arith.addf %26, %28 : vector<32x128xf32>
    %30 = vector.shape_cast %29 : vector<32x128xf32> to vector<2x16x128xf32>
    %31 = vector.extract_strided_slice %4 {offsets = [0, 0], sizes = [1, 128], strides = [1, 1]} : vector<9x128xf32> to vector<1x128xf32>
    %32 = vector.shape_cast %31 : vector<1x128xf32> to vector<1x1x128xf32>
    %33 = vector.broadcast %32 : vector<1x1x128xf32> to vector<2x16x128xf32>
    %34 = arith.mulf %20, %33 : vector<2x16x128xf32>
    %35 = vector.extract_strided_slice %4 {offsets = [1, 0], sizes = [1, 128], strides = [1, 1]} : vector<9x128xf32> to vector<1x128xf32>
    %36 = vector.shape_cast %35 : vector<1x128xf32> to vector<1x1x128xf32>
    %37 = vector.broadcast %36 : vector<1x1x128xf32> to vector<2x16x128xf32>
    %38 = arith.mulf %25, %37 : vector<2x16x128xf32>
    %39 = arith.addf %34, %38 : vector<2x16x128xf32>
    %40 = vector.extract_strided_slice %4 {offsets = [2, 0], sizes = [1, 128], strides = [1, 1]} : vector<9x128xf32> to vector<1x128xf32>
    %41 = vector.shape_cast %40 : vector<1x128xf32> to vector<1x1x128xf32>
    %42 = vector.broadcast %41 : vector<1x1x128xf32> to vector<2x16x128xf32>
    %43 = arith.mulf %30, %42 : vector<2x16x128xf32>
    %44 = arith.addf %39, %43 : vector<2x16x128xf32>
    %45 = vector.extract_strided_slice %4 {offsets = [3, 0], sizes = [1, 128], strides = [1, 1]} : vector<9x128xf32> to vector<1x128xf32>
    %46 = vector.shape_cast %45 : vector<1x128xf32> to vector<1x1x128xf32>
    %47 = vector.broadcast %46 : vector<1x1x128xf32> to vector<2x16x128xf32>
    %48 = arith.mulf %20, %47 : vector<2x16x128xf32>
    %49 = vector.extract_strided_slice %4 {offsets = [4, 0], sizes = [1, 128], strides = [1, 1]} : vector<9x128xf32> to vector<1x128xf32>
    %50 = vector.shape_cast %49 : vector<1x128xf32> to vector<1x1x128xf32>
    %51 = vector.broadcast %50 : vector<1x1x128xf32> to vector<2x16x128xf32>
    %52 = arith.mulf %25, %51 : vector<2x16x128xf32>
    %53 = arith.addf %48, %52 : vector<2x16x128xf32>
    %54 = vector.extract_strided_slice %4 {offsets = [5, 0], sizes = [1, 128], strides = [1, 1]} : vector<9x128xf32> to vector<1x128xf32>
    %55 = vector.shape_cast %54 : vector<1x128xf32> to vector<1x1x128xf32>
    %56 = vector.broadcast %55 : vector<1x1x128xf32> to vector<2x16x128xf32>
    %57 = arith.mulf %30, %56 : vector<2x16x128xf32>
    %58 = arith.addf %53, %57 : vector<2x16x128xf32>
    %59 = vector.extract_strided_slice %4 {offsets = [6, 0], sizes = [1, 128], strides = [1, 1]} : vector<9x128xf32> to vector<1x128xf32>
    %60 = vector.shape_cast %59 : vector<1x128xf32> to vector<1x1x128xf32>
    %61 = vector.broadcast %60 : vector<1x1x128xf32> to vector<2x16x128xf32>
    %62 = arith.mulf %20, %61 : vector<2x16x128xf32>
    %63 = vector.extract_strided_slice %4 {offsets = [7, 0], sizes = [1, 128], strides = [1, 1]} : vector<9x128xf32> to vector<1x128xf32>
    %64 = vector.shape_cast %63 : vector<1x128xf32> to vector<1x1x128xf32>
    %65 = vector.broadcast %64 : vector<1x1x128xf32> to vector<2x16x128xf32>
    %66 = arith.mulf %25, %65 : vector<2x16x128xf32>
    %67 = arith.addf %62, %66 : vector<2x16x128xf32>
    %68 = vector.extract_strided_slice %4 {offsets = [8, 0], sizes = [1, 128], strides = [1, 1]} : vector<9x128xf32> to vector<1x128xf32>
    %69 = vector.shape_cast %68 : vector<1x128xf32> to vector<1x1x128xf32>
    %70 = vector.broadcast %69 : vector<1x1x128xf32> to vector<2x16x128xf32>
    %71 = arith.mulf %30, %70 : vector<2x16x128xf32>
    %72 = arith.addf %67, %71 : vector<2x16x128xf32>
    %cst_16 = arith.constant 0.000000e+00 : f32
    %73 = vector.broadcast %cst_16 : f32 to vector<2x1x128xf32>
    %74 = vector.shape_cast %5 : vector<1x128xf32> to vector<1x1x128xf32>
    %75 = vector.broadcast %74 : vector<1x1x128xf32> to vector<2x16x128xf32>
    %76 = arith.addf %58, %75 : vector<2x16x128xf32>
    %77 = vector.extract_strided_slice %44 {offsets = [0, 0, 0], sizes = [2, 15, 128], strides = [1, 1, 1]} : vector<2x16x128xf32> to vector<2x15x128xf32>
    %78 = tpu.concatenate %73, %77 in 1 : vector<2x1x128xf32>, vector<2x15x128xf32> -> vector<2x16x128xf32>
    %79 = arith.addf %76, %78 : vector<2x16x128xf32>
    %80 = vector.extract_strided_slice %72 {offsets = [0, 1, 0], sizes = [2, 15, 128], strides = [1, 1, 1]} : vector<2x16x128xf32> to vector<2x15x128xf32>
    %81 = tpu.concatenate %80, %73 in 1 : vector<2x15x128xf32>, vector<2x1x128xf32> -> vector<2x16x128xf32>
    %82 = arith.addf %79, %81 : vector<2x16x128xf32>
    %83 = vector.shape_cast %82 : vector<2x16x128xf32> to vector<32x128xf32>
    %cst_17 = arith.constant dense<0.000000e+00> : vector<128xf32>
    %84 = vector.multi_reduction <add>, %83, %cst_17 [0] : vector<32x128xf32> to vector<128xf32>
    %85 = vector.shape_cast %84 : vector<128xf32> to vector<1x128xf32>
    %86 = arith.mulf %83, %83 : vector<32x128xf32>
    %cst_18 = arith.constant dense<0.000000e+00> : vector<128xf32>
    %87 = vector.multi_reduction <add>, %86, %cst_18 [0] : vector<32x128xf32> to vector<128xf32>
    %88 = vector.shape_cast %87 : vector<128xf32> to vector<1x128xf32>
    %89 = tpu.concatenate %85, %88 in 0 : vector<1x128xf32>, vector<1x128xf32> -> vector<2x128xf32>
    %c8_i32 = arith.constant 8 : i32
    %90 = tpu.dynamic_rotate %89 by %c8_i32 dim 1 : vector<2x128xf32>, i32 -> vector<2x128xf32>
    %91 = arith.addf %89, %90 : vector<2x128xf32>
    %c16_i32 = arith.constant 16 : i32
    %92 = tpu.dynamic_rotate %91 by %c16_i32 dim 1 : vector<2x128xf32>, i32 -> vector<2x128xf32>
    %93 = arith.addf %91, %92 : vector<2x128xf32>
    %c32_i32 = arith.constant 32 : i32
    %94 = tpu.dynamic_rotate %93 by %c32_i32 dim 1 : vector<2x128xf32>, i32 -> vector<2x128xf32>
    %95 = arith.addf %93, %94 : vector<2x128xf32>
    %c64_i32 = arith.constant 64 : i32
    %96 = tpu.dynamic_rotate %95 by %c64_i32 dim 1 : vector<2x128xf32>, i32 -> vector<2x128xf32>
    %97 = arith.addf %95, %96 : vector<2x128xf32>
    %98 = vector.extract_strided_slice %97 {offsets = [0, 0], sizes = [1, 128], strides = [1, 1]} : vector<2x128xf32> to vector<1x128xf32>
    %cst_19 = arith.constant 0.001953125 : f32
    %99 = vector.broadcast %cst_19 : f32 to vector<1x128xf32>
    %100 = arith.mulf %98, %99 : vector<1x128xf32>
    %101 = vector.extract_strided_slice %97 {offsets = [1, 0], sizes = [1, 128], strides = [1, 1]} : vector<2x128xf32> to vector<1x128xf32>
    %cst_20 = arith.constant 0.001953125 : f32
    %102 = vector.broadcast %cst_20 : f32 to vector<1x128xf32>
    %103 = arith.mulf %101, %102 : vector<1x128xf32>
    %104 = arith.mulf %100, %100 : vector<1x128xf32>
    %105 = arith.subf %103, %104 : vector<1x128xf32>
    %cst_21 = arith.constant 9.99999974E-6 : f32
    %106 = vector.broadcast %cst_21 : f32 to vector<1x128xf32>
    %107 = arith.addf %105, %106 : vector<1x128xf32>
    %108 = math.rsqrt %107 : vector<1x128xf32>
    %109 = arith.mulf %7, %108 : vector<1x128xf32>
    %110 = arith.mulf %100, %109 : vector<1x128xf32>
    %111 = arith.subf %8, %110 : vector<1x128xf32>
    %112 = vector.broadcast %109 : vector<1x128xf32> to vector<32x128xf32>
    %113 = arith.mulf %83, %112 : vector<32x128xf32>
    %114 = vector.broadcast %111 : vector<1x128xf32> to vector<32x128xf32>
    %115 = arith.addf %113, %114 : vector<32x128xf32>
    %cst_22 = arith.constant 0.000000e+00 : f32
    %116 = vector.broadcast %cst_22 : f32 to vector<32x128xf32>
    %117 = arith.maximumf %115, %116 : vector<32x128xf32>
    %118 = arith.truncf %117 : vector<32x128xf32> to vector<32x128xbf16>
    %cst_23 = arith.constant dense<0.000000e+00> : vector<32x128xf32>
    %119 = tpu.matmul %118, %1, %cst_23 {dimension_numbers = #tpu.dot_dimension_numbers<[1], [0], [0], [1], [0, 0, 1, 1], [], []>} : vector<32x128xbf16>, vector<128x128xbf16>, vector<32x128xf32> -> vector<32x128xf32>
    %120 = vector.broadcast %9 : vector<1x128xf32> to vector<32x128xf32>
    %121 = arith.addf %119, %120 : vector<32x128xf32>
    %cst_24 = arith.constant dense<0.000000e+00> : vector<128xf32>
    %122 = vector.multi_reduction <add>, %121, %cst_24 [0] : vector<32x128xf32> to vector<128xf32>
    %123 = vector.shape_cast %122 : vector<128xf32> to vector<1x128xf32>
    %124 = arith.mulf %121, %121 : vector<32x128xf32>
    %cst_25 = arith.constant dense<0.000000e+00> : vector<128xf32>
    %125 = vector.multi_reduction <add>, %124, %cst_25 [0] : vector<32x128xf32> to vector<128xf32>
    %126 = vector.shape_cast %125 : vector<128xf32> to vector<1x128xf32>
    %127 = tpu.concatenate %123, %126 in 0 : vector<1x128xf32>, vector<1x128xf32> -> vector<2x128xf32>
    %c8_i32_26 = arith.constant 8 : i32
    %128 = tpu.dynamic_rotate %127 by %c8_i32_26 dim 1 : vector<2x128xf32>, i32 -> vector<2x128xf32>
    %129 = arith.addf %127, %128 : vector<2x128xf32>
    %c16_i32_27 = arith.constant 16 : i32
    %130 = tpu.dynamic_rotate %129 by %c16_i32_27 dim 1 : vector<2x128xf32>, i32 -> vector<2x128xf32>
    %131 = arith.addf %129, %130 : vector<2x128xf32>
    %c32_i32_28 = arith.constant 32 : i32
    %132 = tpu.dynamic_rotate %131 by %c32_i32_28 dim 1 : vector<2x128xf32>, i32 -> vector<2x128xf32>
    %133 = arith.addf %131, %132 : vector<2x128xf32>
    %c64_i32_29 = arith.constant 64 : i32
    %134 = tpu.dynamic_rotate %133 by %c64_i32_29 dim 1 : vector<2x128xf32>, i32 -> vector<2x128xf32>
    %135 = arith.addf %133, %134 : vector<2x128xf32>
    %136 = vector.extract_strided_slice %135 {offsets = [0, 0], sizes = [1, 128], strides = [1, 1]} : vector<2x128xf32> to vector<1x128xf32>
    %cst_30 = arith.constant 0.001953125 : f32
    %137 = vector.broadcast %cst_30 : f32 to vector<1x128xf32>
    %138 = arith.mulf %136, %137 : vector<1x128xf32>
    %139 = vector.extract_strided_slice %135 {offsets = [1, 0], sizes = [1, 128], strides = [1, 1]} : vector<2x128xf32> to vector<1x128xf32>
    %cst_31 = arith.constant 0.001953125 : f32
    %140 = vector.broadcast %cst_31 : f32 to vector<1x128xf32>
    %141 = arith.mulf %139, %140 : vector<1x128xf32>
    %142 = arith.mulf %138, %138 : vector<1x128xf32>
    %143 = arith.subf %141, %142 : vector<1x128xf32>
    %cst_32 = arith.constant 9.99999974E-6 : f32
    %144 = vector.broadcast %cst_32 : f32 to vector<1x128xf32>
    %145 = arith.addf %143, %144 : vector<1x128xf32>
    %146 = math.rsqrt %145 : vector<1x128xf32>
    %147 = arith.mulf %10, %146 : vector<1x128xf32>
    %148 = arith.mulf %138, %147 : vector<1x128xf32>
    %149 = arith.subf %11, %148 : vector<1x128xf32>
    %150 = vector.broadcast %147 : vector<1x128xf32> to vector<32x128xf32>
    %151 = arith.mulf %121, %150 : vector<32x128xf32>
    %152 = vector.broadcast %149 : vector<1x128xf32> to vector<32x128xf32>
    %153 = arith.addf %151, %152 : vector<32x128xf32>
    %cst_33 = arith.constant 0.000000e+00 : f32
    %154 = vector.broadcast %cst_33 : f32 to vector<32x128xf32>
    %155 = arith.maximumf %153, %154 : vector<32x128xf32>
    %156 = vector.shape_cast %155 : vector<32x128xf32> to vector<2x16x128xf32>
    %c0_34 = arith.constant 0 : index
    %c0_35 = arith.constant 0 : index
    %c0_36 = arith.constant 0 : index
    %157 = vector.load %arg4[%c0_34, %c0_35, %c0_36] : memref<2x16x128xf32, #tpu.memory_space<vmem>>, vector<2x16x128xf32>
    tpu.vector_store %arg4[%c0_34, %c0_35, %c0_36], %156 {strides = array<i32>} : memref<2x16x128xf32, #tpu.memory_space<vmem>>, vector<2x16x128xf32>,
    %158 = vector.shape_cast %155 : vector<32x128xf32> to vector<2x16x128xf32>
    %159 = vector.extract_strided_slice %158 {offsets = [0, 0, 0], sizes = [2, 15, 128], strides = [1, 1, 1]} : vector<2x16x128xf32> to vector<2x15x128xf32>
    %160 = vector.extract_strided_slice %158 {offsets = [0, 1, 0], sizes = [2, 15, 128], strides = [1, 1, 1]} : vector<2x16x128xf32> to vector<2x15x128xf32>
    %161 = arith.maximumf %159, %160 : vector<2x15x128xf32>
    %162 = vector.shape_cast %161 : vector<2x15x128xf32> to vector<30x128xf32>
    %163 = arith.truncf %162 : vector<30x128xf32> to vector<30x128xbf16>
    %cst_37 = arith.constant dense<0.000000e+00> : vector<16x128xf32>
    %164 = tpu.matmul %3, %163, %cst_37 {dimension_numbers = #tpu.dot_dimension_numbers<[1], [0], [0], [1], [0, 0, 1, 1], [], []>} : vector<16x30xbf16>, vector<30x128xbf16>, vector<16x128xf32> -> vector<16x128xf32>
    %165 = arith.truncf %164 : vector<16x128xf32> to vector<16x128xbf16>
    %cst_38 = arith.constant dense<0.000000e+00> : vector<16x128xf32>
    %166 = tpu.matmul %165, %2, %cst_38 {dimension_numbers = #tpu.dot_dimension_numbers<[1], [0], [0], [1], [0, 0, 1, 1], [], []>} : vector<16x128xbf16>, vector<128x128xbf16>, vector<16x128xf32> -> vector<16x128xf32>
    %167 = vector.extract_strided_slice %166 {offsets = [0, 0], sizes = [16, 64], strides = [1, 1]} : vector<16x128xf32> to vector<16x64xf32>
    %168 = vector.extract_strided_slice %166 {offsets = [0, 64], sizes = [16, 64], strides = [1, 1]} : vector<16x128xf32> to vector<16x64xf32>
    %169 = arith.maximumf %167, %168 : vector<16x64xf32>
    %170 = vector.extract_strided_slice %169 {offsets = [0, 0], sizes = [8, 64], strides = [1, 1]} : vector<16x64xf32> to vector<8x64xf32>
    %171 = vector.extract_strided_slice %169 {offsets = [8, 0], sizes = [8, 64], strides = [1, 1]} : vector<16x64xf32> to vector<8x64xf32>
    %172 = tpu.concatenate %170, %171 in 1 : vector<8x64xf32>, vector<8x64xf32> -> vector<8x128xf32>
    %c0_39 = arith.constant 0 : index
    %c0_40 = arith.constant 0 : index
    %173 = vector.load %arg5[%c0_39, %c0_40] : memref<8x128xf32, #tpu.memory_space<vmem>>, vector<8x128xf32>
    tpu.vector_store %arg5[%c0_39, %c0_40], %172 {strides = array<i32>} : memref<8x128xf32, #tpu.memory_space<vmem>>, vector<8x128xf32>,
    return
  }
  func.func @transform_0(%arg0: i32) -> (i32, i32, i32) {
    %c0_i32 = arith.constant 0 : i32
    %c0_i32_0 = arith.constant 0 : i32
    %c0_i32_1 = arith.constant 0 : i32
    %c0_i32_2 = arith.constant 0 : i32
    return %c0_i32, %c0_i32_0, %c0_i32_1 : i32, i32, i32
  }
  func.func @transform_1(%arg0: i32) -> (i32, i32) {
    %c0_i32 = arith.constant 0 : i32
    %c0_i32_0 = arith.constant 0 : i32
    %c0_i32_1 = arith.constant 0 : i32
    return %c0_i32, %c0_i32_0 : i32, i32
  }
  func.func @transform_2(%arg0: i32) -> (i32, i32) {
    %c0_i32 = arith.constant 0 : i32
    %c0_i32_0 = arith.constant 0 : i32
    %c0_i32_1 = arith.constant 0 : i32
    return %c0_i32, %c0_i32_0 : i32, i32
  }
  func.func @transform_3(%arg0: i32) -> (i32, i32, i32) {
    %c0_i32 = arith.constant 0 : i32
    %c0_i32_0 = arith.constant 0 : i32
    %c0_i32_1 = arith.constant 0 : i32
    %c0_i32_2 = arith.constant 0 : i32
    return %c0_i32, %c0_i32_0, %c0_i32_1 : i32, i32, i32
  }
  func.func @transform_4(%arg0: i32) -> (i32, i32) {
    %c0_i32 = arith.constant 0 : i32
    %c0_i32_0 = arith.constant 0 : i32
    %c0_i32_1 = arith.constant 0 : i32
    return %c0_i32, %c0_i32_0 : i32, i32
  }
}

</mosaic_0001>

<bundles_post_ra>
// kernel: tpu_custom_call.1
= control target key start
LH: loop header
LB: loop body
LE: loop exit
PB: predicated region body
PF: predicated region fallthrough
CT: control target
= control target key end

     0   :  { %10 = vsyncpa [#allocation3], 0  ;;  %s1928_s0 = inlined_call_operand.hbm [shape: f32[2,16,64], index: 0, kind: input, shape index: {}]   ;;  %s1929_s1 = inlined_call_operand.hbm [shape: bf16[192,384], index: 1, kind: input, shape index: {}]   ;;  %s1930_s2 = inlined_call_operand.hbm [shape: f32[18,128], index: 2, kind: input, shape index: {}]   ;;  %s1931_s3 = inlined_call_operand.hbm [shape: f32[2,16,128], index: 3, kind: output, shape index: {0}]   ;;  %s1932_s4 = inlined_call_operand.hbm [shape: f32[8,128], index: 4, kind: output, shape index: {1}]  }
   0x1   :  { %11 = vsyncpa [#allocation6], 0 }
   0x2   :  { %12 = vsyncpa [#allocation4], 0 }
   0x3   :  { %13 = vsyncpa [#allocation10], 0  ;;  %s1612_s15 = smov [#allocation5]   ;;  %s1494_s19 = scalar_lea.hbm %s1929_s1, 4608 }
   0x4   :  { %s31_s16 = sshll.u32 %s1612_s15, 4  ;;  %p1495_p0 = scmp.ne.s32.totalorder %s1929_s1, %s1494_s19  ;;  %s32_s16 = int_to_ptr.vmem [resolvable:$true] %s31_s16 }
   0x5   :  { %p1498_p1 = scmp.lt.u32.totalorder %s1494_s19, %s1929_s1 }
   0x7   :  { %p1500_p2 = pnand %p1498_p1, %p1495_p0 }
   0x9   :  { %1503 = shalt.err (!%p1500_p2)
}
   0xa   :  { %s1504_s24 = scalar_lea.vmem %s32_s16, 4608  ;;  %p1509_p4 = scmp.lt.s32.totalorder %s32_s16, %s32_s16 }
   0xb   :  { %p1505_p3 = scmp.ne.s32.totalorder %s32_s16, %s1504_s24  ;;  %p1510_p5 = scmp.lt.s32.totalorder %s1504_s24, %s1504_s24 }
   0xd   :  { %p1511_p6 = por %p1510_p5, %p1509_p4 }
   0xf   :  { %p1512_p7 = pnand %p1511_p6, %p1505_p3 }
  0x11   :  { %1515 = shalt.err (!%p1512_p7)
}
  0x12   :  { %s1613_s25 = smov 192   ;;  %s1614_s26 = smov 12  }
  0x13   :  { %37 = dma.hbm_to_vmem [thread:$0]  %s1929_s1, 4608, %s32_s16, [#allocation6], %s1613_s25, %s1613_s25, %s1614_s26  }
  0x14   :  { %s1615_s29 = smov [#allocation2]   ;;  %s1516_s7 = scalar_lea.hbm %s1928_s0, 512 }
  0x15   :  { %s19_s30 = sshll.u32 %s1615_s29, 4  ;;  %p1517_p8 = scmp.ne.s32.totalorder %s1928_s0, %s1516_s7  ;;  %s20_s30 = int_to_ptr.vmem [resolvable:$true] %s19_s30 }
  0x16   :  { %p1520_p9 = scmp.lt.u32.totalorder %s1516_s7, %s1928_s0 }
  0x18   :  { %p1522_p10 = pnand %p1520_p9, %p1517_p8 }
  0x1a   :  { %1525 = shalt.err (!%p1522_p10)
}
  0x1b   :  { %s1526_s12 = scalar_lea.vmem %s20_s30, 512  ;;  %p1531_p12 = scmp.lt.s32.totalorder %s20_s30, %s20_s30 }
  0x1c   :  { %p1527_p11 = scmp.ne.s32.totalorder %s20_s30, %s1526_s12  ;;  %p1532_p13 = scmp.lt.s32.totalorder %s1526_s12, %s1526_s12 }
  0x1e   :  { %p1533_p0 = por %p1532_p13, %p1531_p12 }
  0x20   :  { %p1534_p1 = pnand %p1533_p0, %p1527_p11 }
  0x22   :  { %1537 = shalt.err (!%p1534_p1)
}
  0x23   :  { %s1616_s1 = smov 128   ;;  %s1617_s13 = smov 8  }
  0x24   :  { %25 = dma.hbm_to_vmem [thread:$0]  %s1928_s0, 512, %s20_s30, [#allocation3], %s1616_s1, %s1616_s1, %s1617_s13  }
  0x25   :  { %s1618_s16 = smov [#allocation7]   ;;  %s1538_s20 = scalar_lea.hbm %s1930_s2, 384 }
  0x26   :  { %s43_s17 = sshll.u32 %s1618_s16, 4  ;;  %p1539_p2 = scmp.ne.s32.totalorder %s1930_s2, %s1538_s20  ;;  %s44_s17 = int_to_ptr.vmem [resolvable:$true] %s43_s17 }
  0x27   :  { %p1542_p3 = scmp.lt.u32.totalorder %s1538_s20, %s1930_s2 }
  0x29   :  { %p1544_p4 = pnand %p1542_p3, %p1539_p2 }
  0x2b   :  { %1547 = shalt.err (!%p1544_p4)
}
  0x2c   :  { %s1548_s25 = scalar_lea.vmem %s44_s17, 384  ;;  %p1553_p6 = scmp.lt.s32.totalorder %s44_s17, %s44_s17 }
  0x2d   :  { %p1549_p5 = scmp.ne.s32.totalorder %s44_s17, %s1548_s25  ;;  %p1554_p7 = scmp.lt.s32.totalorder %s1548_s25, %s1548_s25 }
  0x2f   :  { %p1555_p8 = por %p1554_p7, %p1553_p6 }
  0x31   :  { %p1556_p9 = pnand %p1555_p8, %p1549_p5 }
  0x33   :  { %1559 = shalt.err (!%p1556_p9)
}
  0x34   :  { %49 = dma.hbm_to_vmem [thread:$0]  %s1930_s2, 384, %s44_s17, [#allocation6], %s1616_s1, %s1616_s1, %s1617_s13  }
  0x35   :  { %1604 = dma.done.wait [#allocation3], 512  }
  0x36   :  { %1605 = vsyncadd [#allocation3], 4294966784 }
  0x37   :  { %1606 = dma.done.wait [#allocation6], 4992  }
  0x38   :  { %1607 = vsyncadd [#allocation6], 4294962304  ;;  %v1619_v0 = vmov 0   ;;  %v1457_v1 = vld [vmem:[#allocation5 + $0x4] ss:$12 sps:$4 sm:$0xff]   ;;  %v120_v12 = vld [vmem:[#allocation2 + $0x8] sm:$0xff]  ;;  %v298_v19 = vlaneseq }
  0x39   :  { %228 = vmatprep.mubr.bf16.mxu0 %v1619_v0  ;;  %v1459_v2 = vld [vmem:[#allocation5] ss:$12 sps:$4 sm:$0xff]   ;;  %196 = vmatprep.subr.bf16.mxu0 %v1457_v1  ;;  %v1460_v3 = vld [vmem:[#allocation5 + $0x8] ss:$12 sps:$4 sm:$0xff]   ;;  %v1463_v5 = vld [vmem:[#allocation5 + $0x18] ss:$12 sps:$4 sm:$0xff]  }
  0x3a   :  { %197 = vmatpush1.bf16.msra.mxu0 %v1459_v2  ;;  %v1461_v4 = vld [vmem:[#allocation5 + $0x1c] ss:$12 sps:$4 sm:$0xff]   ;;  %1381 = vmatprep.subr.bf16.mxu1 %v1460_v3  ;;  %v1464_v6 = vld [vmem:[#allocation5 + $0x20] ss:$12 sps:$4 sm:$0xff]   ;;  %v1468_v8 = vld [vmem:[#allocation5 + $0x38] ss:$12 sps:$4 sm:$0xff]  }
  0x3b   :  { %1382 = vmatpush3.bf16.msra.mxu1 %v1460_v3  ;;  %198 = vmatprep.subr.bf16.mxu0 %v1461_v4  ;;  %v1465_v7 = vld [vmem:[#allocation5 + $0x34] ss:$12 sps:$4 sm:$0xff]   ;;  %v1467_v9 = vld [vmem:[#allocation5 + $0x30] ss:$12 sps:$4 sm:$0xff]   ;;  %v1469_v10 = vld [vmem:[#allocation5 + $0x4c] ss:$12 sps:$4 sm:$0xff]  }
  0x3c   :  { %1383 = vmatprep.subr.bf16.mxu1 %v1464_v6  ;;  %v119_v11 = vld [vmem:[#allocation2] sm:$0xff]  ;;  %vm189_vm0 = vcmask 523264   ;;  %v1471_v13 = vld [vmem:[#allocation5 + $0x48] ss:$12 sps:$4 sm:$0xff]   ;;  %v1472_v14 = vld [vmem:[#allocation5 + $0x50] ss:$12 sps:$4 sm:$0xff]  }
  0x3d   :  { %v123_v15 = vpack.c.bf16 %v120_v12, %v119_v11  ;;  %v121_v16 = vld [vmem:[#allocation2 + $0x10] sm:$0xff]  ;;  %v122_v17 = vld [vmem:[#allocation2 + $0x18] sm:$0xff]  ;;  %v1699_v20 = vshrl.u32 %v298_v19, 7  ;;  %v113_v22 = vld [vmem:[#allocation7 + $0xa] sm:$0x7]  ;;  %vm430_vm1 = vcmask 1040384  }
  0x3e   :  { %199 = vmatpush1.bf16.msra.mxu0 %v1463_v5  ;;  %v124_v18 = vpack.c.bf16 %v122_v17, %v121_v16  ;;  %v110_v26 = vld [vmem:[#allocation7] sm:$0xff]  ;;  %v1746_v3 = vld [vmem:[#allocation7 + $0x8] ss:$0 sm:$0xff]  ;;  %vm451_vm2 = vcmask 1046528   ;;  %s1620_s2 = smov 16   ;;  %s1621_s27 = smov 32  }
  0x3f   :  { %200 = vmatprep.subr.bf16.mxu0 %v1465_v7  ;;  %1384 = vmatpush3.bf16.msra.mxu1 %v1464_v6  ;;  %v1702_v21 = vsub.s32 0, %v1699_v20  ;;  %v308_v23 = vsub.s32 1, %v1699_v20  ;;  %v356_v24 = vsub.s32 3, %v1699_v20  ;;  %v388_v25 = vsub.s32 6, %v1699_v20  ;;  %s1622_s28 = smov 64   ;;  %s1626_s29 = smov [#allocation8]  }
  0x40   :  { %1385 = vmatprep.subr.bf16.mxu1 %v1468_v8  ;;  %1389 = vmatprep.mubr.msk.bf16.mxu1 %vm189_vm0, %v123_v15  ;;  %v364_v27 = vsub.s32 4, %v1699_v20  ;;  %v396_v28 = vsub.s32 7, %v1699_v20  ;;  %v316_v31 = vsub.s32 2, %v1699_v20  ;;  %v376_v39 = vsub.s32 5, %v1699_v20  ;;  %s1286_s30 = sshll.u32 %s1626_s29, 4  ;;  %s1287_s30 = int_to_ptr.vmem [resolvable:$true] %s1286_s30 }
  0x41   :  { %v1710_v29 = vrot.slane %v113_v22, %v1702_v21  ;;  %v1712_v30 = vrot.slane %v113_v22, %v308_v23  ;;  %v1716_v32 = vrot.slane %v110_v26, %v1702_v21  ;;  %v1718_v33 = vrot.slane %v110_v26, %v356_v24  ;;  %v1330_v24 = vld [vmem:[#allocation7 + $0x9] ss:$0 sm:$0xff]  ;;  %s1560_s5 = scalar_lea.vmem %s1287_s30, 512  ;;  %p1565_p11 = scmp.lt.s32.totalorder %s1287_s30, %s1287_s30 }
  0x42   :  { %201 = vmatpush1.bf16.msra.mxu0 %v1467_v9  ;;  %v1720_v34 = vrot.slane %v110_v26, %v388_v25  ;;  %v1722_v36 = vrot.slane %v110_v26, %v308_v23  ;;  %v1724_v37 = vrot.slane %v110_v26, %v364_v27  ;;  %v1726_v38 = vrot.slane %v110_v26, %v396_v28  ;;  %p1561_p10 = scmp.ne.s32.totalorder %s1287_s30, %s1560_s5  ;;  %p1566_p12 = scmp.lt.s32.totalorder %s1560_s5, %s1560_s5 }
  0x43   :  { %202 = vmatprep.subr.bf16.mxu0 %v1469_v10  ;;  %1386 = vmatpush3.bf16.msra.mxu1 %v1468_v8  ;;  %v317_v45 = vrot.slane %v113_v22, %v316_v31  ;;  %v1731_v46 = vrot.slane %v110_v26, %v316_v31  ;;  %v1740_v56 = vrot.slane %v110_v26, %v376_v39  ;;  %vm1624_vm3 = vmmov 0  }
  0x44   :  { %1387 = vmatprep.subr.bf16.mxu1 %v1472_v14  ;;  %vm1127_vm4 = vcmask 244736   ;;  %p1567_p13 = por %p1566_p12, %p1565_p11 }
  0x46   :  { %203 = vmatpush1.bf16.msra.mxu0 %v1471_v13  ;;  %p1568_p0 = pnand %p1567_p13, %p1561_p10 }
  0x47   :  { %1388 = vmatpush3.bf16.msra.mxu1 %v1472_v14 }
  0x49   :  { %1325 = vmatmul.mubr.msk.bf16.vlgmr.msra.gmra.mrb[0].mxu0 %vm189_vm0, %v123_v15 }
  0x4a   :  { %238 = vmatprep.mubr.bf16.mxu0 %v1619_v0  ;;  %1390 = vmatmul.mubr.msk.bf16.vlgmr.msra.gmra.mrb[0].mxu1 %vm189_vm0, %v124_v18 }
  0x51   :  { %1326 = vmatmul.mubr.msk.bf16.gmra.mrb[4].mxu0 %vm189_vm0, %v124_v18 }
 0x11c   :  { %v230_v35 = vpop.f32.mrb[0].mxu0 }
 0x11d   :  { %v302_v40 = vadd.f32 %v1710_v29, %v230_v35  ;;  %v232_v41 = vpop.f32.mrb[1].mxu0  ;;  %v1391_v44 = vpop.f32.mrb[0].mxu1 }
 0x11e   :  { %v310_v42 = vadd.f32 %v1712_v30, %v232_v41  ;;  %v234_v43 = vpop.f32.mrb[2].mxu0  ;;  %v283_v52 = vpop.f32.mrb[1].mxu1  ;;  %v320_v60 = vadd.f32 %v1391_v44, %v317_v45 }
 0x11f   :  { %v326_v47 = vmul.f32 %v1716_v32, %v302_v40  ;;  %v358_v48 = vmul.f32 %v1718_v33, %v302_v40  ;;  %v390_v49 = vmul.f32 %v1720_v34, %v302_v40  ;;  %v303_v50 = vadd.f32 %v1710_v29, %v234_v43  ;;  %v236_v51 = vpop.f32.mrb[3].mxu0  ;;  %v1392_v57 = vpop.f32.mrb[2].mxu1 }
 0x120   :  { %v334_v53 = vmul.f32 %v1722_v36, %v310_v42  ;;  %v366_v54 = vmul.f32 %v1724_v37, %v310_v42  ;;  %v398_v55 = vmul.f32 %v1726_v38, %v310_v42  ;;  %v311_v61 = vadd.f32 %v1712_v30, %v236_v51  ;;  %v286_v62 = vpop.f32.mrb[3].mxu1 }
 0x121   :  { %v327_v58 = vmul.f32 %v1716_v32, %v303_v50  ;;  %v359_v59 = vmul.f32 %v1718_v33, %v303_v50  ;;  %v391_v2 = vmul.f32 %v1720_v34, %v303_v50  ;;  %v318_v7 = vadd.f32 %v317_v45, %v283_v52 }
 0x122   :  { %v338_v63 = vadd.f32 %v334_v53, %v326_v47  ;;  %v370_v0 = vadd.f32 %v366_v54, %v358_v48  ;;  %v402_v1 = vadd.f32 %v398_v55, %v390_v49  ;;  %v335_v4 = vmul.f32 %v1722_v36, %v311_v61 }
 0x123   :  { %v367_v5 = vmul.f32 %v1724_v37, %v311_v61  ;;  %v399_v6 = vmul.f32 %v1726_v38, %v311_v61  ;;  %v319_v8 = vadd.f32 %v317_v45, %v286_v62  ;;  %v348_v10 = vmul.f32 %v1731_v46, %v320_v60 }
 0x124   :  { %v240_v9 = vpop.f32.mrb[4].mxu0  ;;  %v339_v11 = vadd.f32 %v335_v4, %v327_v58  ;;  %v346_v16 = vmul.f32 %v1731_v46, %v318_v7  ;;  %v378_v17 = vmul.f32 %v1740_v56, %v318_v7  ;;  %v410_v18 = vmul.f32 %v1746_v3, %v318_v7 }
 0x125   :  { %v371_v12 = vadd.f32 %v367_v5, %v359_v59  ;;  %v304_v13 = vadd.f32 %v1710_v29, %v240_v9  ;;  %v242_v14 = vpop.f32.mrb[5].mxu0  ;;  %v403_v15 = vadd.f32 %v399_v6, %v391_v2  ;;  %v380_v22 = vmul.f32 %v1740_v56, %v320_v60 }
 0x126   :  { %v244_v19 = vpop.f32.mrb[6].mxu0  ;;  %v412_v23 = vmul.f32 %v1746_v3, %v320_v60  ;;  %v321_v25 = vadd.f32 %v1392_v57, %v317_v45  ;;  %v347_v26 = vmul.f32 %v1731_v46, %v319_v8  ;;  %v350_v28 = vadd.f32 %v346_v16, %v338_v63 }
 0x127   :  { %v246_v27 = vpop.f32.mrb[7].mxu0  ;;  %v382_v31 = vadd.f32 %v378_v17, %v370_v0  ;;  %v414_v35 = vadd.f32 %v410_v18, %v402_v1  ;;  %v379_v39 = vmul.f32 %v1740_v56, %v319_v8  ;;  %v411_v41 = vmul.f32 %v1746_v3, %v319_v8 }
 0x128   :  { %v351_v40 = vadd.f32 %v347_v26, %v339_v11  ;;  %v328_v42 = vmul.f32 %v1716_v32, %v304_v13  ;;  %v360_v43 = vmul.f32 %v1718_v33, %v304_v13  ;;  %v431_v47 = vrot.slane %v350_v28, 7 }
 0x129   :  { %v422_v44 = vadd.f32 %v1330_v24, %v382_v31  ;;  %v452_v48 = vrot.slane %v414_v35, 1  ;;  %v383_v49 = vadd.f32 %v379_v39, %v371_v12  ;;  %v415_v45 = vadd.f32 %v411_v41, %v403_v15 }
 0x12a   :  { %v432_v50 = vrot.slane %v351_v40, 7  ;;  %v392_v51 = vmul.f32 %v1720_v34, %v304_v13  ;;  %v312_v52 = vadd.f32 %v1712_v30, %v242_v14  ;;  %v441_v53 = vsel %vm430_vm1, 0.0, %v431_v47 }
 0x12b   :  { %v423_v54 = vadd.f32 %v1330_v24, %v383_v49  ;;  %v305_v55 = vadd.f32 %v1710_v29, %v244_v19  ;;  %v313_v57 = vadd.f32 %v1712_v30, %v246_v27  ;;  %v443_v58 = vadd.f32 %v441_v53, %v422_v44 }
 0x12c   :  { %v433_v59 = vsel %vm430_vm1, %v431_v47, %v432_v50  ;;  %v453_v60 = vrot.slane %v415_v45, 1  ;;  %v336_v61 = vmul.f32 %v1722_v36, %v312_v52  ;;  %v368_v63 = vmul.f32 %v1724_v37, %v312_v52 }
 0x12d   :  { %v444_v62 = vadd.f32 %v433_v59, %v423_v54  ;;  %v400_v0 = vmul.f32 %v1726_v38, %v312_v52  ;;  %v329_v1 = vmul.f32 %v1716_v32, %v305_v55  ;;  %v361_v30 = vmul.f32 %v1718_v33, %v305_v55 }
 0x12e   :  { %v454_v2 = vsel %vm451_vm2, %v452_v48, %v453_v60  ;;  %v462_v4 = vsel %vm451_vm2, %v453_v60, 0.0  ;;  %v340_v29 = vadd.f32 %v336_v61, %v328_v42  ;;  %v372_v7 = vadd.f32 %v368_v63, %v360_v43 }
 0x12f   :  { %v1776_v5 = vadd.f32 %v454_v2, %v443_v58  ;;  %v1778_v6 = vadd.f32 %v462_v4, %v444_v62  ;;  %v404_v8 = vadd.f32 %v400_v0, %v392_v51  ;;  %v393_v11 = vmul.f32 %v1720_v34, %v305_v55 }
 0x130   :  { %v352_v9 = vadd.f32 %v348_v10, %v340_v29  ;;  %v337_v12 = vmul.f32 %v1722_v36, %v313_v57  ;;  %v369_v32 = vmul.f32 %v1724_v37, %v313_v57  ;;  %v349_v13 = vmul.f32 %v1731_v46, %v321_v25 }
 0x131   :  { %v384_v14 = vadd.f32 %v380_v22, %v372_v7  ;;  %v416_v15 = vadd.f32 %v412_v23, %v404_v8  ;;  %v401_v16 = vmul.f32 %v1726_v38, %v313_v57  ;;  %v381_v33 = vmul.f32 %v1740_v56, %v321_v25  ;;  %v1474_v8 = vld [vmem:[#allocation5 + $0x78] ss:$12 sps:$4 sm:$0xff]  }
 0x132   :  { %v434_v17 = vrot.slane %v352_v9, 7  ;;  %v341_v18 = vadd.f32 %v337_v12, %v329_v1  ;;  %v373_v19 = vadd.f32 %v369_v32, %v361_v30  ;;  %v413_v26 = vmul.f32 %v1746_v3, %v321_v25  ;;  %v1473_v30 = vld [vmem:[#allocation5 + $0x60] ss:$12 sps:$4 sm:$0xff]   ;;  %v1476_v12 = vld [vmem:[#allocation5 + $0xa8] ss:$12 sps:$4 sm:$0xff]  }
 0x133   :  { %v424_v10 = vadd.f32 %v1330_v24, %v384_v14  ;;  %v405_v27 = vadd.f32 %v401_v16, %v393_v11  ;;  %v455_v23 = vrot.slane %v416_v15, 1  ;;  %v478_v38 = vmul.f32 %v1778_v6, %v1778_v6  ;;  %1393 = vmatprep.subr.bf16.mxu0 %v1473_v30  ;;  %v1475_v11 = vld [vmem:[#allocation5 + $0x90] ss:$12 sps:$4 sm:$0xff]   ;;  %v1477_v32 = vld [vmem:[#allocation5 + $0xc0] ss:$12 sps:$4 sm:$0xff]  }
 0x134   :  { %v442_v34 = vsel %vm430_vm1, 0.0, %v434_v17  ;;  %v353_v36 = vadd.f32 %v349_v13, %v341_v18  ;;  %v385_v28 = vadd.f32 %v381_v33, %v373_v19  ;;  %v468_v41 = vadd.f32 %v1778_v6, %v1776_v5  ;;  %1394 = vmatpush3.bf16.msra.mxu0 %v1473_v30  ;;  %v1478_v13 = vld [vmem:[#allocation5 + $0xd8] ss:$12 sps:$4 sm:$0xff]   ;;  %v1479_v14 = vld [vmem:[#allocation5 + $0xf0] ss:$12 sps:$4 sm:$0xff]  }
 0x135   :  { %v445_v37 = vadd.f32 %v442_v34, %v424_v10  ;;  %v417_v31 = vadd.f32 %v413_v26, %v405_v27  ;;  %1395 = vmatprep.subr.bf16.mxu0 %v1474_v8  ;;  %v1480_v15 = vld [vmem:[#allocation5 + $0x108] ss:$12 sps:$4 sm:$0xff]   ;;  %v114_v34 = vld [vmem:[#allocation7 + $0xd] sm:$0x1] }
 0x136   :  { %v425_v46 = vadd.f32 %v1330_v24, %v385_v28  ;;  %v435_v22 = vrot.slane %v353_v36, 7  ;;  %v477_v24 = vmul.f32 %v1776_v5, %v1776_v5 }
 0x137   :  { %v456_v35 = vrot.slane %v417_v31, 1 }
 0x138   :  { %v436_v56 = vsel %vm430_vm1, %v434_v17, %v435_v22  ;;  %v481_v47 = vadd.f32 %v478_v38, %v477_v24  ;;  %1396 = vmatpush3.bf16.msra.mxu0 %v1474_v8 }
 0x139   :  { %v446_v39 = vadd.f32 %v436_v56, %v425_v46  ;;  %v457_v3 = vsel %vm451_vm2, %v455_v23, %v456_v35  ;;  %v463_v25 = vsel %vm451_vm2, %v456_v35, 0.0  ;;  %1397 = vmatprep.subr.bf16.mxu0 %v1475_v11 }
 0x13a   :  { %v1793_v40 = vadd.f32 %v457_v3, %v445_v37  ;;  %v115_v37 = vld [vmem:[#allocation7 + $0xe] sm:$0x1] }
 0x13b   :  { %v1799_v42 = vadd.f32 %v463_v25, %v446_v39 }
 0x13c   :  { %v469_v43 = vadd.f32 %v468_v41, %v1793_v40  ;;  %v479_v44 = vmul.f32 %v1793_v40, %v1793_v40  ;;  %1398 = vmatpush3.bf16.msra.mxu0 %v1475_v11 }
 0x13d   :  { %v480_v48 = vmul.f32 %v1799_v42, %v1799_v42  ;;  %1399 = vmatprep.subr.bf16.mxu0 %v1476_v12 }
 0x13e   :  { %v470_v49 = vadd.f32 %v469_v43, %v1799_v42  ;;  %v482_v45 = vadd.f32 %v481_v47, %v479_v44 }
 0x140   :  { %v471_v50 = vrot.slane %v470_v49, 4  ;;  %v483_v51 = vadd.f32 %v482_v45, %v480_v48  ;;  %1400 = vmatpush3.bf16.msra.mxu0 %v1476_v12 }
 0x141   :  { %1401 = vmatprep.subr.bf16.mxu0 %v1477_v32 }
 0x142   :  { %v472_v52 = vadd.f32 %v471_v50, %v470_v49  ;;  %v484_v53 = vrot.slane %v483_v51, 4 }
 0x144   :  { %v473_v54 = vrot.slane %v472_v52, 2  ;;  %v485_v55 = vadd.f32 %v484_v53, %v483_v51  ;;  %1402 = vmatpush3.bf16.msra.mxu0 %v1477_v32 }
 0x145   :  { %1403 = vmatprep.subr.bf16.mxu0 %v1478_v13 }
 0x146   :  { %v474_v57 = vadd.f32 %v473_v54, %v472_v52  ;;  %v486_v58 = vrot.slane %v485_v55, 2 }
 0x148   :  { %v475_v59 = vrot.slane %v474_v57, 1  ;;  %v487_v60 = vadd.f32 %v486_v58, %v485_v55  ;;  %1404 = vmatpush3.bf16.msra.mxu0 %v1478_v13 }
 0x149   :  { %1405 = vmatprep.subr.bf16.mxu0 %v1479_v14 }
 0x14a   :  { %v488_v61 = vrot.slane %v487_v60, 1  ;;  %v476_v62 = vadd.f32 %v475_v59, %v474_v57 }
 0x14c   :  { %v489_v63 = vadd.f32 %v488_v61, %v487_v60  ;;  %1406 = vmatpush3.bf16.msra.mxu0 %v1479_v14 }
 0x14d   :  { %1407 = vmatprep.subr.bf16.mxu0 %v1480_v15 }
 0x14e   :  { %v490_v0 = vsel %vm430_vm1, %v476_v62, %v489_v63 }
 0x14f   :  { %491 = vrot.lane.b32.xlu0 %v490_v0, %s1617_s13 }
 0x150   :  { %1408 = vmatpush3.bf16.msra.mxu0 %v1480_v15 }
 0x1c1   :  { %v492_v1 = vpop.permute.xlu0 %491 }
 0x1c2   :  { %v493_v2 = vadd.f32 %v492_v1, %v490_v0 }
 0x1c4   :  { %494 = vrot.lane.b32.xlu0 %v493_v2, %s1620_s2 }
 0x236   :  { %v495_v4 = vpop.permute.xlu0 %494 }
 0x237   :  { %v496_v29 = vadd.f32 %v495_v4, %v493_v2 }
 0x239   :  { %497 = vrot.lane.b32.xlu1 %v496_v29, %s1621_s27 }
 0x2ab   :  { %v498_v7 = vpop.permute.xlu1 %497 }
 0x2ac   :  { %v499_v9 = vadd.f32 %v498_v7, %v496_v29 }
 0x2ae   :  { %500 = vrot.lane.b32.xlu1 %v499_v9, %s1622_s28 }
 0x320   :  { %v501_v16 = vpop.permute.xlu1 %500 }
 0x321   :  { %v502_v33 = vadd.f32 %v501_v16, %v499_v9 }
 0x323   :  { %v503_v17 = vmul.f32 0.001953125, %v502_v33 }
 0x325   :  { %v504_v18 = vmul.f32 %v503_v17, %v503_v17 }
 0x327   :  { %v506_v19 = vrot.slane %v504_v18, 7 }
 0x329   :  { %v508_v26 = vsub.f32 %v503_v17, %v506_v19 }
 0x32b   :  { %v509_v10 = vadd.f32 1e-05, %v508_v26 }
 0x32d   :  { %1490 = vrsqrt.f32 %v509_v10  ;;  %v1623_v10 = vmov 0.0  }
 0x32e   :  { %1413 = vmatprep.subr.bf16.mxu1 %v1623_v10  ;;  %1417 = vmatprep.mubr.msk.bf16.mxu1 %vm1624_vm3, %v1623_v10 }
 0x337   :  { %v1491_v27 = vpop.eup %1490 }
 0x338   :  { %v512_v36 = vrot.slane %v1491_v27, 1 }
 0x33a   :  { %v514_v28 = vmul.f32 %v512_v36, %v114_v34 }
 0x33c   :  { %v515_v31 = vmul.f32 %v514_v28, %v503_v17  ;;  %v520_v46 = vrot.slane %v514_v28, %v1702_v21 }
 0x33e   :  { %v516_v22 = vsub.f32 %v115_v37, %v515_v31  ;;  %v521_v23 = vmul.f32 %v520_v46, %v1776_v5  ;;  %v522_v38 = vmul.f32 %v520_v46, %v1778_v6  ;;  %v523_v56 = vmul.f32 %v520_v46, %v1793_v40  ;;  %v1331_v5 = vld [vmem:[#allocation7 + $0xf] ss:$0 sm:$0xff] }
 0x33f   :  { %v524_v39 = vmul.f32 %v520_v46, %v1799_v42 }
 0x340   :  { %v528_v35 = vrot.slane %v516_v22, %v1702_v21 }
 0x342   :  { %v529_v3 = vadd.f32 %v528_v35, %v521_v23  ;;  %v530_v25 = vadd.f32 %v528_v35, %v522_v38  ;;  %v531_v41 = vadd.f32 %v528_v35, %v523_v56  ;;  %v532_v24 = vadd.f32 %v528_v35, %v524_v39  ;;  %v117_v23 = vld [vmem:[#allocation7 + $0x10] sm:$0x1]  ;;  %v118_v56 = vld [vmem:[#allocation7 + $0x11] sm:$0x1] }
 0x344   :  { %v533_v43 = vmax.f32 %v529_v3, 0.0  ;;  %v534_v44 = vmax.f32 %v530_v25, 0.0  ;;  %v535_v47 = vmax.f32 %v531_v41, 0.0  ;;  %v536_v48 = vmax.f32 %v532_v24, 0.0 }
 0x345   :  { %v1625_v25 = vmov 1966171168  }
 0x346   :  { %v537_v49 = vpack.c.bf16 %v534_v44, %v533_v43  ;;  %v538_v45 = vpack.c.bf16 %v536_v48, %v535_v47  ;;  %v737_v41 = vunpack.c.l.s4 %v1625_v25 }
 0x348   :  { %1409 = vmatprep.mubr.bf16.mxu0 %v537_v49 }
 0x349   :  { %1410 = vmatmul.mubr.bf16.vlgmr.msra.gmra.mrb[8].mxu0 %v538_v45  ;;  %v738_v45 = vunpack.c.0.s8 %v737_v41 }
 0x41c   :  { %v1411_v50 = vpop.f32.mrb[8].mxu0 }
 0x41d   :  { %v625_v51 = vpop.f32.mrb[9].mxu0  ;;  %v634_v53 = vadd.f32 %v1411_v50, %v1331_v5 }
 0x41e   :  { %v626_v6 = vadd.f32 %v1331_v5, %v625_v51  ;;  %v1412_v52 = vpop.f32.mrb[10].mxu0 }
 0x41f   :  { %v628_v40 = vpop.f32.mrb[11].mxu0  ;;  %v637_v55 = vadd.f32 %v1412_v52, %v1331_v5  ;;  %v651_v59 = vmul.f32 %v634_v53, %v634_v53 }
 0x420   :  { %v629_v42 = vadd.f32 %v1331_v5, %v628_v40  ;;  %v649_v54 = vmul.f32 %v626_v6, %v626_v6 }
 0x421   :  { %v652_v62 = vmul.f32 %v637_v55, %v637_v55 }
 0x422   :  { %v640_v57 = vadd.f32 %v629_v42, %v626_v6  ;;  %v650_v58 = vmul.f32 %v629_v42, %v629_v42 }
 0x424   :  { %v641_v60 = vadd.f32 %v640_v57, %v634_v53  ;;  %v653_v61 = vadd.f32 %v650_v58, %v649_v54 }
 0x426   :  { %v642_v63 = vadd.f32 %v641_v60, %v637_v55  ;;  %v654_v0 = vadd.f32 %v653_v61, %v651_v59  ;;  %v1829_v59 = vsub.s32 %v738_v45, %v1699_v20 }
 0x428   :  { %v643_v1 = vrot.slane %v642_v63, 4  ;;  %v655_v2 = vadd.f32 %v654_v0, %v652_v62 }
 0x42a   :  { %v644_v4 = vadd.f32 %v643_v1, %v642_v63  ;;  %v656_v29 = vrot.slane %v655_v2, 4 }
 0x42c   :  { %v645_v30 = vrot.slane %v644_v4, 2  ;;  %v657_v7 = vadd.f32 %v656_v29, %v655_v2 }
 0x42e   :  { %v646_v8 = vadd.f32 %v645_v30, %v644_v4  ;;  %v658_v9 = vrot.slane %v657_v7, 2 }
 0x430   :  { %v647_v11 = vrot.slane %v646_v8, 1  ;;  %v659_v12 = vadd.f32 %v658_v9, %v657_v7 }
 0x432   :  { %v660_v32 = vrot.slane %v659_v12, 1  ;;  %v648_v13 = vadd.f32 %v647_v11, %v646_v8 }
 0x434   :  { %v661_v14 = vadd.f32 %v660_v32, %v659_v12 }
 0x436   :  { %v662_v15 = vsel %vm430_vm1, %v648_v13, %v661_v14 }
 0x437   :  { %663 = vrot.lane.b32.xlu0 %v662_v15, %s1617_s13 }
 0x4a9   :  { %v664_v16 = vpop.permute.xlu0 %663 }
 0x4aa   :  { %v665_v33 = vadd.f32 %v664_v16, %v662_v15 }
 0x4ac   :  { %666 = vrot.lane.b32.xlu1 %v665_v33, %s1620_s2 }
 0x51e   :  { %v667_v17 = vpop.permute.xlu1 %666 }
 0x51f   :  { %v668_v18 = vadd.f32 %v667_v17, %v665_v33 }
 0x521   :  { %669 = vrot.lane.b32.xlu0 %v668_v18, %s1621_s27 }
 0x593   :  { %v670_v19 = vpop.permute.xlu0 %669 }
 0x594   :  { %v671_v26 = vadd.f32 %v670_v19, %v668_v18 }
 0x596   :  { %672 = vrot.lane.b32.xlu1 %v671_v26, %s1622_s28 }
 0x608   :  { %v673_v27 = vpop.permute.xlu1 %672 }
 0x609   :  { %v674_v34 = vadd.f32 %v673_v27, %v671_v26 }
 0x60b   :  { %v675_v36 = vmul.f32 0.001953125, %v674_v34 }
 0x60d   :  { %v676_v28 = vmul.f32 %v675_v36, %v675_v36 }
 0x60f   :  { %v678_v37 = vrot.slane %v676_v28, 7 }
 0x611   :  { %v680_v31 = vsub.f32 %v675_v36, %v678_v37 }
 0x613   :  { %v681_v46 = vadd.f32 1e-05, %v680_v31 }
 0x615   :  { %1492 = vrsqrt.f32 %v681_v46 }
 0x61f   :  { %v1493_v22 = vpop.eup %1492 }
 0x620   :  { %v684_v35 = vrot.slane %v1493_v22, 1 }
 0x622   :  { %v686_v38 = vmul.f32 %v684_v35, %v117_v23 }
 0x624   :  { %v687_v39 = vmul.f32 %v686_v38, %v675_v36  ;;  %v692_v3 = vrot.slane %v686_v38, %v1702_v21 }
 0x626   :  { %v688_v24 = vsub.f32 %v118_v56, %v687_v39  ;;  %v693_v43 = vmul.f32 %v692_v3, %v626_v6  ;;  %v694_v44 = vmul.f32 %v692_v3, %v629_v42  ;;  %v695_v47 = vmul.f32 %v692_v3, %v634_v53 }
 0x627   :  { %v696_v48 = vmul.f32 %v692_v3, %v637_v55 }
 0x628   :  { %v700_v49 = vrot.slane %v688_v24, %v1702_v21 }
 0x62a   :  { %v701_v5 = vadd.f32 %v700_v49, %v693_v43  ;;  %v702_v50 = vadd.f32 %v700_v49, %v694_v44  ;;  %v703_v51 = vadd.f32 %v700_v49, %v695_v47  ;;  %v704_v52 = vadd.f32 %v700_v49, %v696_v48 }
 0x62c   :  { %v705_v40 = vmax.f32 %v701_v5, 0.0  ;;  %v706_v54 = vmax.f32 %v702_v50, 0.0  ;;  %v707_v57 = vmax.f32 %v703_v51, 0.0  ;;  %v708_v58 = vmax.f32 %v704_v52, 0.0 }
 0x62e   :  { %v717_v60 = vrot.slane %v705_v40, 1  ;;  %v718_v61 = vrot.slane %v706_v54, 1  ;;  %v720_v6 = vrot.slane %v707_v57, 1  ;;  %v721_v42 = vrot.slane %v708_v58, 1  ;;  %709 = vst [vmem:[#allocation8] sm:$0xff] %v705_v40  ;;  %710 = vst [vmem:[#allocation8 + $0x8] sm:$0xff] %v706_v54 }
 0x62f   :  { %711 = vst [vmem:[#allocation8 + $0x10] sm:$0xff] %v707_v57  ;;  %712 = vst [vmem:[#allocation8 + $0x18] sm:$0xff] %v708_v58 }
 0x630   :  { %v719_v21 = vsel %vm451_vm2, %v717_v60, %v718_v61  ;;  %v722_v53 = vsel %vm451_vm2, %v720_v6, %v721_v42  ;;  %v728_v55 = vmax.f32 %v706_v54, %v718_v61  ;;  %v730_v62 = vmax.f32 %v708_v58, %v721_v42 }
 0x631   :  { %v727_v63 = vmax.f32 %v705_v40, %v719_v21  ;;  %v729_v0 = vmax.f32 %v707_v57, %v722_v53 }
 0x632   :  { %v784_v1 = vcombine.high %v728_v55, %v728_v55  ;;  %v791_v20 = vrot.slane %v728_v55, %v1829_v59  ;;  %v881_v2 = vcombine.high %v730_v62, %v730_v62  ;;  %v1835_v4 = vrot.slane %v730_v62, %v1829_v59 }
 0x633   :  { %v735_v29 = vcombine.high %v727_v63, %v727_v63  ;;  %v742_v30 = vrot.slane %v727_v63, %v1829_v59  ;;  %v839_v7 = vrot.slane %v729_v0, %v1829_v59  ;;  %v832_v8 = vcombine.high %v729_v0, %v729_v0 }
 0x634   :  { %v798_v9 = vrot.slane %v784_v1, %v1829_v59  ;;  %v799_v11 = vcombine.high %v791_v20, %v791_v20  ;;  %v807_v12 = vrot.slane %v791_v20, %v1829_v59  ;;  %v895_v32 = vrot.slane %v881_v2, %v1829_v59 }
 0x635   :  { %v749_v13 = vrot.slane %v735_v29, %v1829_v59  ;;  %v750_v14 = vcombine.high %v742_v30, %v742_v30  ;;  %v758_v15 = vrot.slane %v742_v30, %v1829_v59  ;;  %v855_v16 = vrot.slane %v839_v7, %v1829_v59 }
 0x636   :  { %v800_v33 = vcombine.high %v798_v9, %v798_v9  ;;  %v814_v17 = vrot.slane %v798_v9, %v1829_v59  ;;  %v821_v18 = vrot.slane %v799_v11, %v1829_v59  ;;  %v846_v19 = vrot.slane %v832_v8, %v1829_v59 }
 0x637   :  { %v751_v26 = vcombine.high %v749_v13, %v749_v13  ;;  %v765_v27 = vrot.slane %v749_v13, %v1829_v59  ;;  %v772_v34 = vrot.slane %v750_v14, %v1829_v59  ;;  %v847_v36 = vcombine.high %v839_v7, %v839_v7 }
 0x638   :  { %v828_v28 = vrot.slane %v800_v33, %v1829_v59  ;;  %v830_v37 = vcombine.high %v814_v17, %v814_v17  ;;  %v978_v31 = vcombine.low %v807_v12, %v821_v18  ;;  %v1342_v46 = vcombine.high %v807_v12, %v821_v18 }
 0x639   :  { %v779_v22 = vrot.slane %v751_v26, %v1829_v59  ;;  %v929_v23 = vcombine.low %v758_v15, %v772_v34  ;;  %v1340_v35 = vcombine.high %v758_v15, %v772_v34  ;;  %v848_v38 = vcombine.high %v846_v19, %v846_v19 }
 0x63a   :  { %v980_v56 = vcombine.low %v814_v17, %v828_v28  ;;  %v981_v39 = vcombine.low %v830_v37, %v855_v16  ;;  %v988_v3 = vrot.slane %v978_v31, %v1829_v59  ;;  %v995_v25 = vrot.slane %v1342_v46, %v1829_v59 }
 0x63b   :  { %v931_v41 = vcombine.low %v765_v27, %v779_v22  ;;  %v1341_v24 = vcombine.high %v765_v27, %v779_v22  ;;  %v939_v43 = vrot.slane %v929_v23, %v1829_v59  ;;  %v946_v44 = vrot.slane %v1340_v35, %v1829_v59 }
 0x63c   :  { %v1002_v47 = vrot.slane %v980_v56, %v1829_v59  ;;  %v1009_v48 = vrot.slane %v981_v39, %v1829_v59  ;;  %v1010_v49 = vcombine.low %v988_v3, %v995_v25  ;;  %v862_v45 = vrot.slane %v846_v19, %v1829_v59  ;;  %v1481_v3 = vld [vmem:[#allocation5 + $0x68] ss:$12 sps:$4 sm:$0xff]   ;;  %v1482_v25 = vld [vmem:[#allocation5 + $0x64] ss:$12 sps:$4 sm:$0xff]  }
 0x63d   :  { %v953_v5 = vrot.slane %v931_v41, %v1829_v59  ;;  %v960_v50 = vrot.slane %v1341_v24, %v1829_v59  ;;  %v961_v51 = vcombine.low %v939_v43, %v946_v44  ;;  %v869_v52 = vrot.slane %v847_v36, %v1829_v59  ;;  %v1483_v41 = vld [vmem:[#allocation5 + $0x7c] ss:$12 sps:$4 sm:$0xff]   ;;  %v1485_v24 = vld [vmem:[#allocation5 + $0xac] ss:$12 sps:$4 sm:$0xff]   ;;  %v1486_v43 = vld [vmem:[#allocation5 + $0xc4] ss:$12 sps:$4 sm:$0xff]  }
 0x63e   :  { %v1011_v40 = vcombine.low %v1002_v47, %v1009_v48  ;;  %v1018_v54 = vrot.slane %v1010_v49, %v1829_v59  ;;  %v876_v57 = vrot.slane %v848_v38, %v1829_v59  ;;  %v877_v58 = vcombine.high %v855_v16, %v855_v16  ;;  %v1487_v44 = vld [vmem:[#allocation5 + $0xdc] ss:$12 sps:$4 sm:$0xff]   ;;  %v1488_v47 = vld [vmem:[#allocation5 + $0xf4] ss:$12 sps:$4 sm:$0xff]   ;;  %v1489_v48 = vld [vmem:[#allocation5 + $0x10c] ss:$12 sps:$4 sm:$0xff]  }
 0x63f   :  { %v962_v60 = vcombine.low %v953_v5, %v960_v50  ;;  %v969_v61 = vrot.slane %v961_v51, %v1829_v59  ;;  %v878_v6 = vcombine.high %v862_v45, %v862_v45  ;;  %v879_v42 = vcombine.high %v869_v52, %v869_v52 }
 0x640   :  { %v1025_v21 = vrot.slane %v1011_v40, %v1829_v59  ;;  %v880_v53 = vcombine.high %v876_v57, %v876_v57  ;;  %v896_v55 = vcombine.high %v1835_v4, %v1835_v4  ;;  %v897_v62 = vcombine.high %v895_v32, %v895_v32 }
 0x641   :  { %v976_v63 = vrot.slane %v962_v60, %v1829_v59  ;;  %v904_v0 = vrot.slane %v1835_v4, %v1829_v59  ;;  %v911_v1 = vrot.slane %v895_v32, %v1829_v59  ;;  %v1027_v20 = vcombine.low %v869_v52, %v877_v58 }
 0x642   :  { %v1026_v2 = vcombine.low %v1018_v54, %v1025_v21  ;;  %v918_v29 = vrot.slane %v896_v55, %v1829_v59  ;;  %v925_v30 = vrot.slane %v897_v62, %v1829_v59  ;;  %v1028_v7 = vcombine.low %v879_v42, %v862_v45 }
 0x643   :  { %v977_v8 = vcombine.low %v969_v61, %v976_v63  ;;  %v926_v9 = vcombine.high %v904_v0, %v904_v0  ;;  %v927_v11 = vcombine.high %v911_v1, %v911_v1  ;;  %v1029_v12 = vcombine.low %v876_v57, %v878_v6 }
 0x644   :  { %v928_v13 = vcombine.high %v918_v29, %v918_v29  ;;  %v1030_v14 = vcombine.low %v880_v53, %v904_v0  ;;  %v1037_v15 = vrot.slane %v1027_v20, %v1829_v59  ;;  %v1044_v16 = vrot.slane %v1028_v7, %v1829_v59 }
 0x645   :  { %v1120_v4 = vpack.c.bf16 %v1026_v2, %v977_v8  ;;  %v1076_v33 = vcombine.low %v918_v29, %v926_v9  ;;  %v1078_v32 = vcombine.low %v925_v30, %v927_v11  ;;  %v1051_v17 = vrot.slane %v1029_v12, %v1829_v59 }
 0x646   :  { %v1058_v18 = vrot.slane %v1030_v14, %v1829_v59  ;;  %v1059_v19 = vcombine.low %v1037_v15, %v1044_v16  ;;  %v1077_v26 = vcombine.low %v928_v13, %v911_v1 }
 0x647   :  { %1414 = vmatpush3.bf16.msra.mxu1 %v1120_v4  ;;  %v1085_v34 = vrot.slane %v1076_v33, %v1829_v59  ;;  %v1099_v28 = vrot.slane %v1078_v32, %v1829_v59 }
 0x648   :  { %1415 = vmatprep.subr.bf16.mxu1 %v1623_v10  ;;  %v1060_v27 = vcombine.low %v1051_v17, %v1058_v18  ;;  %v1092_v36 = vrot.slane %v1077_v26, %v1829_v59  ;;  %v1067_v37 = vrot.slane %v1059_v19, %v1829_v59 }
 0x649   :  { %v1114_v35 = vrot.slane %v1099_v28, %v1829_v59 }
 0x64a   :  { %v1074_v31 = vrot.slane %v1060_v27, %v1829_v59  ;;  %v1100_v46 = vcombine.low %v1085_v34, %v1092_v36 }
 0x64c   :  { %v1075_v22 = vcombine.low %v1067_v37, %v1074_v31  ;;  %v1107_v23 = vrot.slane %v1100_v46, %v1829_v59  ;;  %v1484_v59 = vld [vmem:[#allocation5 + $0x94] ss:$12 sps:$4 sm:$0xff]  }
 0x64e   :  { %v1115_v38 = vcombine.low %v1107_v23, %v1114_v35 }
 0x650   :  { %v1121_v56 = vpack.c.bf16 %v1115_v38, %v1075_v22 }
 0x652   :  { %v1132_v39 = vsel %vm451_vm2, %v1121_v56, 0 }
 0x653   :  { %1416 = vmatpush3.bf16.msra.mxu1 %v1132_v39 }
 0x654   :  { %1421 = vmatprep.subr.bf16.mxu1 %v1623_v10 }
 0x656   :  { %1418 = vmatmul.mubr.msk.bf16.vlgmr.msra.gmra.mrb[4].mxu1 %vm1127_vm4, %v1481_v3 }
 0x657   :  { %1422 = vmatpush3.bf16.msra.mxu1 %v1482_v25  ;;  %1437 = vmatprep.mubr.msk.bf16.mxu1 %vm1624_vm3, %v1623_v10 }
 0x658   :  { %1423 = vmatprep.subr.bf16.mxu1 %v1623_v10 }
 0x65b   :  { %1424 = vmatpush3.bf16.msra.mxu1 %v1483_v41 }
 0x65c   :  { %1425 = vmatprep.subr.bf16.mxu1 %v1623_v10 }
 0x65f   :  { %1426 = vmatpush3.bf16.msra.mxu1 %v1484_v59 }
 0x660   :  { %1427 = vmatprep.subr.bf16.mxu1 %v1623_v10 }
 0x663   :  { %1428 = vmatpush3.bf16.msra.mxu1 %v1485_v24 }
 0x664   :  { %1429 = vmatprep.subr.bf16.mxu1 %v1623_v10 }
 0x667   :  { %1430 = vmatpush3.bf16.msra.mxu1 %v1486_v43 }
 0x668   :  { %1431 = vmatprep.subr.bf16.mxu1 %v1623_v10 }
 0x66b   :  { %1432 = vmatpush3.bf16.msra.mxu1 %v1487_v44 }
 0x66c   :  { %1433 = vmatprep.subr.bf16.mxu1 %v1623_v10 }
 0x66f   :  { %1434 = vmatpush3.bf16.msra.mxu1 %v1488_v47 }
 0x670   :  { %1435 = vmatprep.subr.bf16.mxu1 %v1623_v10 }
 0x673   :  { %1436 = vmatpush3.bf16.msra.mxu1 %v1489_v48 }
 0x729   :  { %v1168_v49 = vpop.f32.mrb[4].mxu1 }
 0x72a   :  { %v1419_v45 = vpop.f32.mrb[5].mxu1 }
 0x72b   :  { %v1171_v5 = vpop.f32.mrb[6].mxu1 }
 0x72c   :  { %v1175_v50 = vpack.c.bf16 %v1171_v5, %v1168_v49  ;;  %v1420_v51 = vpop.f32.mrb[7].mxu1 }
 0x72e   :  { %1438 = vmatmul.mubr.bf16.vlgmr.msra.gmra.mrb[8].mxu1 %v1175_v50 }
 0x801   :  { %v1258_v52 = vpop.f32.mrb[8].mxu1 }
 0x802   :  { %1267 = vrot.lane.b32.xlu1 %v1258_v52, %s1622_s28  ;;  %v1439_v40 = vpop.f32.mrb[9].mxu1 }
 0x803   :  { %v1261_v54 = vpop.f32.mrb[10].mxu1 }
 0x804   :  { %1269 = vrot.lane.b32.xlu0 %v1261_v54, %s1622_s28  ;;  %v1440_v57 = vpop.f32.mrb[11].mxu1 }
 0x805   :  { %1571 = shalt.err (!%p1568_p0)
}
 0x806   :  { %s1572_s8 = scalar_lea.hbm %s1931_s3, 512 }
 0x807   :  { %p1573_p1 = scmp.ne.s32.totalorder %s1931_s3, %s1572_s8  ;;  %p1576_p2 = scmp.lt.u32.totalorder %s1572_s8, %s1931_s3 }
 0x809   :  { %p1578_p3 = pnand %p1576_p2, %p1573_p1 }
 0x80b   :  { %1581 = shalt.err (!%p1578_p3)
}
 0x80c   :  { %1292 = dma.vmem_to_hbm [thread:$0]  %s1287_s30, 512, %s1931_s3, [#allocation4], %s1616_s1, %s1616_s1, %s1617_s13  }
 0x80d   :  { %s1627_s16 = smov [#allocation9]  }
 0x80e   :  { %s1299_s17 = sshll.u32 %s1627_s16, 4  ;;  %s1300_s17 = int_to_ptr.vmem [resolvable:$true] %s1299_s17 }
 0x80f   :  { %s1582_s18 = scalar_lea.vmem %s1300_s17, 128  ;;  %p1587_p5 = scmp.lt.s32.totalorder %s1300_s17, %s1300_s17 }
 0x810   :  { %p1583_p4 = scmp.ne.s32.totalorder %s1300_s17, %s1582_s18  ;;  %p1588_p6 = scmp.lt.s32.totalorder %s1582_s18, %s1582_s18 }
 0x812   :  { %p1589_p7 = por %p1588_p6, %p1587_p5 }
 0x814   :  { %p1590_p8 = pnand %p1589_p7, %p1583_p4 }
 0x874   :  { %v1268_v60 = vpop.permute.xlu1 %1267 }
 0x875   :  { %v1273_v61 = vmax.f32 %v1258_v52, %v1268_v60 }
 0x876   :  { %v1270_v10 = vpop.permute.xlu0 %1269 }
 0x877   :  { %v1274_v58 = vmax.f32 %v1261_v54, %v1270_v10 }
 0x879   :  { %1276 = vrot.lane.b32.xlu0 %v1274_v58, %s1622_s28 }
 0x8eb   :  { %v1277_v6 = vpop.permute.xlu0 %1276 }
 0x8ec   :  { %v1279_v42 = vsel %vm189_vm0, %v1273_v61, %v1277_v6 }
 0x8ed   :  { %1280 = vst [vmem:[#allocation9] sm:$0xff] %v1279_v42 }
 0x8ee   :  { %1593 = shalt.err (!%p1590_p8)
}
 0x8ef   :  { %s1594_s13 = scalar_lea.hbm %s1932_s4, 128 }
 0x8f0   :  { %p1595_p9 = scmp.ne.s32.totalorder %s1932_s4, %s1594_s13  ;;  %p1598_p10 = scmp.lt.u32.totalorder %s1594_s13, %s1932_s4 }
 0x8f2   :  { %p1600_p11 = pnand %p1598_p10, %p1595_p9 }
 0x8f4   :  { %1603 = shalt.err (!%p1600_p11)
}
 0x8f5   :  { %1302 = dma.vmem_to_hbm [thread:$0]  %s1300_s17, 128, %s1932_s4, [#allocation10]  }
 0x8f6   :  { %1608 = dma.done.wait [#allocation4], 512  }
 0x8f7   :  { %1609 = vsyncadd [#allocation4], 4294966784 }
 0x8f8   :  { %1610 = dma.done.wait [#allocation10], 128  }
 0x8f9   :  { %1611 = vsyncadd [#allocation10], 4294967168 }
 0x8fa   :  { %1309 = vsyncpa [#allocation3], 1 }
 0x8fb   :  { %1310 = vsyncpa [#allocation6], 1 }
 0x8fc   :  { %1311 = vsyncpa [#allocation4], 1 }
 0x8fd   :  { %1312 = vsyncpa [#allocation10], 1 }

</bundles_post_ra>
